<compile_context>
chip_gen: v6e
topology: v6e:2x2x1
jax: 0.10.0
libtpu: 0.0.40
codegen_flags: <defaults>
</compile_context>

<pallas_src>
import math

import jax
import jax.numpy as jnp
from jax.experimental import pallas as pl
from jax.experimental.pallas import tpu as pltpu


def fourier_feat_kernel(t_ref, emb_ref, w_ref, b_ref, o_ref):
    # h = t @ emb with K == 1  ->  broadcast multiply on the VPU.
    h = t_ref[...] * emb_ref[...]                               # (TILE_B, half_dim)
    # hc = [cos(h), sin(h)]; both halves fit in one lane tile for small
    # half_dim, so the concat is a cheap XLU shift + select.
    hc = jnp.concatenate([jnp.cos(h), jnp.sin(h)], axis=-1)     # (TILE_B, d_time)
    # Single fused MXU matmul (f32 accumulate) + bias broadcast over rows.
    o_ref[...] = (
        jnp.dot(hc, w_ref[...], preferred_element_type=jnp.float32) + b_ref[...]
    )


def _round_up(x, m):
    return ((x + m - 1) // m) * m


def fourier_featurization(t, emb, w, bias, *, tile_b=512):
    """t: (B, 1) -> (B, 1, d_model), matching the PyTorch forward.

    emb : (1, half_dim)     f32   (registered buffer)
    w   : (d_time, d_model) f32   (= proj.weight.T)
    bias: (1, d_model)      f32
    """
    B = t.shape[0]
    d_time, d_model = w.shape
    half_dim = emb.shape[1]

    # Lane-dense output: pad d_model up to a multiple of 128 (avoids vst.msk).
    d_model_p = _round_up(d_model, 128)
    if d_model_p != d_model:
        w = jnp.pad(w, ((0, 0), (0, d_model_p - d_model)))
        bias = jnp.pad(bias, ((0, 0), (0, d_model_p - d_model)))

    # Batch tiling: rows per grid step, multiple of 8 sublanes.  Big tiles for
    # large B so the out-tile DMA overlaps compute and per-step (~0.35 us)
    # overhead is amortized; a single right-sized tile for small B.
    if B >= tile_b:
        tb = tile_b
    else:
        tb = _round_up(max(B, 8), 8)
    B_p = _round_up(B, tb)
    if B_p != B:
        t = jnp.pad(t, ((0, B_p - B), (0, 0)))

    grid = (B_p // tb,)

    cost = pl.CostEstimate(
        flops=2 * B_p * d_time * d_model_p,
        transcendentals=B_p * d_time,
        bytes_accessed=(B_p * 4                         # t
                        + d_time * d_model_p * 4        # W
                        + d_model_p * 4                 # bias
                        + B_p * d_model_p * 4),         # out
    )

    out2d = pl.pallas_call(
        fourier_feat_kernel,
        out_shape=jax.ShapeDtypeStruct((B_p, d_model_p), jnp.float32),
        grid_spec=pltpu.PrefetchScalarGridSpec(
            num_scalar_prefetch=0,
            grid=grid,
            in_specs=[
                # t tile: marches down the batch axis.
                pl.BlockSpec((tb, 1), lambda i: (i, 0)),
                # emb / W / bias: same block every step -> fetched once, resident.
                pl.BlockSpec((1, half_dim), lambda i: (0, 0)),
                pl.BlockSpec((d_time, d_model_p), lambda i: (0, 0)),
                pl.BlockSpec((1, d_model_p), lambda i: (0, 0)),
            ],
            out_specs=pl.BlockSpec((tb, d_model_p), lambda i: (i, 0)),
        ),
        compiler_params=pltpu.CompilerParams(
            # Batch axis is embarrassingly parallel -> shard across v7x's 2 TCs.
            dimension_semantics=("parallel",),
            # Sized against v7x's 64 MiB VMEM; weights + double-buffered
            # (tb x d_model_p) tiles are far below this for sane d_model.
            vmem_limit_bytes=48 * 1024 * 1024,
        ),
        cost_estimate=cost,
    )(t.astype(jnp.float32), emb, w, bias)

    return out2d[:B, None, :d_model]                            # (B, 1, d_model)


def make_params(d_time, d_model, max_positions=2000, seed=0):
    assert d_time % 2 == 0, "d_time needs to be even"
    half_dim = d_time // 2
    # buffer 'emb' — same formula as the PyTorch module.
    scale = math.log(max_positions) / (half_dim - 1)
    emb = jnp.exp(jnp.arange(half_dim, dtype=jnp.float32) * -scale)[None, :]

    # nn.Linear(d_time, d_model) default init: U(-1/sqrt(d_time), 1/sqrt(d_time)).
    key = jax.random.PRNGKey(seed)
    kw, kb = jax.random.split(key)
    bound = 1.0 / math.sqrt(d_time)
    # PyTorch weight is (d_model, d_time); store transposed as (d_time, d_model).
    w_t = jax.random.uniform(kw, (d_time, d_model), jnp.float32, -bound, bound)
    bias = jax.random.uniform(kb, (1, d_model), jnp.float32, -bound, bound)
    return emb, w_t, bias


def reference(t, emb, w_t, bias):
    h = t.astype(jnp.float32) @ emb                             # (B, half)
    hc = jnp.concatenate([jnp.cos(h), jnp.sin(h)], axis=-1)     # (B, d_time)
    return (hc @ w_t + bias)[:, None, :]


if __name__ == "__main__":
    B, d_time, d_model = 8, 32, 128
    emb, w_t, bias = make_params(d_time, d_model)

    key = jax.random.PRNGKey(0)
    # timestep input, shape (B, 1) as implied by `t.float() @ self.emb`.
    t = jax.random.uniform(key, (B, 1), jnp.float32, 0.0, 1000.0)

    out = fourier_featurization(t, emb, w_t, bias)
    out = jax.block_until_ready(out)

    ref = reference(t, emb, w_t, bias)
    assert out.shape == (B, 1, d_model), out.shape
    assert jnp.allclose(out, ref, atol=1e-4, rtol=1e-4), float(
        jnp.max(jnp.abs(out - ref))
    )
    print("KERNEL_OK")
</pallas_src>

<mosaic_0001>
module attributes {stable_mosaic.version = 11 : i64} {
  func.func @fourier_feat_kernel(%arg0: i32, %arg1: memref<8x1xf32, #tpu.memory_space<vmem>>, %arg2: memref<1x16xf32, #tpu.memory_space<vmem>>, %arg3: memref<32x128xf32, #tpu.memory_space<vmem>>, %arg4: memref<1x128xf32, #tpu.memory_space<vmem>>, %arg5: memref<8x128xf32, #tpu.memory_space<vmem>>) attributes {dimension_semantics = [#tpu.dimension_semantics<parallel>], iteration_bounds = array<i64: 1>, scalar_prefetch = 0 : i64, scratch_operands = 0 : i64, tpu.core_type = #tpu.core_type<tc>, window_params = [{transform_indices = @transform_0, window_bounds = array<i64: 8, 1>}, {pipeline_mode = #tpu.pipeline_mode<synchronous>, transform_indices = @transform_1, window_bounds = array<i64: 1, 16>}, {pipeline_mode = #tpu.pipeline_mode<synchronous>, transform_indices = @transform_2, window_bounds = array<i64: 32, 128>}, {pipeline_mode = #tpu.pipeline_mode<synchronous>, transform_indices = @transform_3, window_bounds = array<i64: 1, 128>}, {transform_indices = @transform_4, window_bounds = array<i64: 8, 128>}]} {
    %c0 = arith.constant 0 : index
    %c0_0 = arith.constant 0 : index
    %0 = vector.load %arg1[%c0, %c0_0] : memref<8x1xf32, #tpu.memory_space<vmem>>, vector<8x1xf32>
    %c0_1 = arith.constant 0 : index
    %c0_2 = arith.constant 0 : index
    %1 = vector.load %arg2[%c0_1, %c0_2] : memref<1x16xf32, #tpu.memory_space<vmem>>, vector<1x16xf32>
    %2 = vector.broadcast %0 : vector<8x1xf32> to vector<8x16xf32>
    %3 = vector.broadcast %1 : vector<1x16xf32> to vector<8x16xf32>
    %4 = arith.mulf %2, %3 : vector<8x16xf32>
    %5 = math.cos %4 : vector<8x16xf32>
    %6 = math.sin %4 : vector<8x16xf32>
    %7 = tpu.concatenate %5, %6 in 1 : vector<8x16xf32>, vector<8x16xf32> -> vector<8x32xf32>
    %c0_3 = arith.constant 0 : index
    %c0_4 = arith.constant 0 : index
    %8 = vector.load %arg3[%c0_3, %c0_4] : memref<32x128xf32, #tpu.memory_space<vmem>>, vector<32x128xf32>
    %cst = arith.constant dense<0.000000e+00> : vector<8x128xf32>
    %9 = tpu.matmul %7, %8, %cst {dimension_numbers = #tpu.dot_dimension_numbers<[1], [0], [0], [1], [0, 0, 1, 1], [], []>} : vector<8x32xf32>, vector<32x128xf32>, vector<8x128xf32> -> vector<8x128xf32>
    %c0_5 = arith.constant 0 : index
    %c0_6 = arith.constant 0 : index
    %10 = vector.load %arg4[%c0_5, %c0_6] : memref<1x128xf32, #tpu.memory_space<vmem>>, vector<1x128xf32>
    %11 = vector.broadcast %10 : vector<1x128xf32> to vector<8x128xf32>
    %12 = arith.addf %9, %11 : vector<8x128xf32>
    %c0_7 = arith.constant 0 : index
    %c0_8 = arith.constant 0 : index
    %13 = vector.load %arg5[%c0_7, %c0_8] : memref<8x128xf32, #tpu.memory_space<vmem>>, vector<8x128xf32>
    tpu.vector_store %arg5[%c0_7, %c0_8], %12 {strides = array<i32>} : memref<8x128xf32, #tpu.memory_space<vmem>>, vector<8x128xf32>,
    return
  }
  func.func @transform_0(%arg0: i32) -> (i32, i32) {
    %c0_i32 = arith.constant 0 : i32
    %c0_i32_0 = arith.constant 0 : i32
    return %arg0, %c0_i32 : i32, i32
  }
  func.func @transform_1(%arg0: i32) -> (i32, i32) {
    %c0_i32 = arith.constant 0 : i32
    %c0_i32_0 = arith.constant 0 : i32
    %c0_i32_1 = arith.constant 0 : i32
    return %c0_i32, %c0_i32_0 : i32, i32
  }
  func.func @transform_2(%arg0: i32) -> (i32, i32) {
    %c0_i32 = arith.constant 0 : i32
    %c0_i32_0 = arith.constant 0 : i32
    %c0_i32_1 = arith.constant 0 : i32
    return %c0_i32, %c0_i32_0 : i32, i32
  }
  func.func @transform_3(%arg0: i32) -> (i32, i32) {
    %c0_i32 = arith.constant 0 : i32
    %c0_i32_0 = arith.constant 0 : i32
    %c0_i32_1 = arith.constant 0 : i32
    return %c0_i32, %c0_i32_0 : i32, i32
  }
  func.func @transform_4(%arg0: i32) -> (i32, i32) {
    %c0_i32 = arith.constant 0 : i32
    %c0_i32_0 = arith.constant 0 : i32
    return %arg0, %c0_i32 : i32, i32
  }
}

</mosaic_0001>

<bundles_post_ra>
// kernel: tpu_custom_call.1
= control target key start
LH: loop header
LB: loop body
LE: loop exit
PB: predicated region body
PF: predicated region fallthrough
CT: control target
= control target key end

     0   :  { %9 = vsyncpa [#allocation3], 0  ;;  %s534_s0 = inlined_call_operand.vmem [shape: f32[8,1], index: 0, kind: input, shape index: {}]   ;;  %s535_s1 = inlined_call_operand.vmem [shape: f32[1,16], index: 1, kind: input, shape index: {}]   ;;  %s536_s2 = inlined_call_operand.hbm [shape: f32[32,128], index: 2, kind: input, shape index: {}]   ;;  %s537_s3 = inlined_call_operand.vmem [shape: f32[1,128], index: 3, kind: input, shape index: {}]   ;;  %s538_s4 = inlined_call_operand.hbm [shape: f32[8,128], index: 4, kind: output, shape index: {}]  }
   0x1   :  { %10 = vsyncpa [#allocation4], 0  ;;  %s454_s15 = smov [#allocation2]  }
   0x2   :  { %s20_s16 = sshll.u32 %s454_s15, 4  ;;  %s21_s16 = int_to_ptr.vmem [resolvable:$true] %s20_s16 }
   0x3   :  { %s418_s17 = scalar_lea.vmem %s21_s16, 512  ;;  %p423_p1 = scmp.lt.s32.totalorder %s21_s16, %s21_s16 }
   0x4   :  { %p419_p0 = scmp.ne.s32.totalorder %s21_s16, %s418_s17  ;;  %p424_p2 = scmp.lt.s32.totalorder %s418_s17, %s418_s17 }
   0x6   :  { %p425_p3 = por %p424_p2, %p423_p1 }
   0x8   :  { %p426_p4 = pnand %p425_p3, %p419_p0 }
   0xa   :  { %429 = shalt.err (!%p426_p4)
}
   0xb   :  { %s455_s18 = smov 128   ;;  %s456_s19 = smov 8  }
   0xc   :  { %26 = dma.hbm_to_vmem [thread:$0]  %s536_s2, 512, %s21_s16, [#allocation3], %s455_s18, %s455_s18, %s456_s19  }
   0xd   :  { %450 = dma.done.wait [#allocation3], 512  }
   0xe   :  { %451 = vsyncadd [#allocation3], 4294966784  ;;  %v457_v0 = vmov 0   ;;  %v32_v1 = vld [vmem:[%s534_s0] sm:$0xff]  ;;  %v262_v2 = vld [vmem:[#allocation2 + $0x18] sm:$0xff]  ;;  %v458_v3 = vmov 0.0  }
   0xf   :  { %405 = vset.pattern.permute.xlu0 %v457_v0  ;;  %376 = vmatprep.subr.mxu0 %v458_v3  ;;  %v261_v4 = vld [vmem:[#allocation2 + $0x10] sm:$0xff]  ;;  %v260_v5 = vld [vmem:[#allocation2 + $0x8] sm:$0xff]  ;;  %v360_v6 = vld [vmem:[%s535_s1] ss:$0 sm:$0xff]  ;;  %v459_v19 = vmov 683565275  }
  0x10   :  { %36 = vperm.xlu0 %405, %v32_v1   ;;  %377 = vmatpush3.msra.mxu0 %v262_v2  ;;  %v460_v21 = vmov 2475754826   ;;  %v461_v24 = vmov 2131351028   ;;  %v462_v27 = vmov 2102212464  }
  0x11   :  { %378 = vmatprep.subr.mxu0 %v458_v3  ;;  %v463_v30 = vmov 920167782   ;;  %v464_v33 = vmov 1326507024   ;;  %vm465_vm9 = vmmov 0   ;;  %s466_s0 = smov 16  }
  0x12   :  { %379 = vmatpush3.msra.mxu0 %v261_v4  ;;  %384 = vmatprep.mubr.msk.f32.mxu0 %vm465_vm9, %v458_v3  ;;  %s467_s26 = smov [#allocation5]  }
  0x13   :  { %380 = vmatprep.subr.mxu0 %v458_v3  ;;  %s351_s27 = sshll.u32 %s467_s26, 4  ;;  %s352_s27 = int_to_ptr.vmem [resolvable:$true] %s351_s27 }
  0x14   :  { %381 = vmatpush3.msra.mxu0 %v260_v5  ;;  %s430_s28 = scalar_lea.vmem %s352_s27, 128  ;;  %p435_p6 = scmp.lt.s32.totalorder %s352_s27, %s352_s27 }
  0x15   :  { %382 = vmatprep.subr.mxu0 %v458_v3  ;;  %p431_p5 = scmp.ne.s32.totalorder %s352_s27, %s430_s28  ;;  %p436_p7 = scmp.lt.s32.totalorder %s430_s28, %s430_s28 }
  0x17   :  { %p437_p8 = por %p436_p7, %p435_p6 }
  0x19   :  { %p438_p9 = pnand %p437_p8, %p431_p5 }
  0x8b   :  { %v37_v7 = vpop.permute.xlu0 %36 }
  0x8c   :  { %v506_v8 = vmul.f32 %v360_v6, %v37_v7 }
  0x8e   :  { %v49_v9 = vand.u32 2139095040, %v506_v8  ;;  %v46_v13 = vand.u32 2147483647, %v506_v8  ;;  %vm48_vm7 = vcmp.lt.s32.totalorder %v506_v8, 0 }
  0x90   :  { %v50_v10 = vshrl.u32 %v49_v9, 23  ;;  %v53_v16 = vand.u32 8388607, %v46_v13  ;;  %vm47_vm8 = vcmp.le.f32.partialorder %v46_v13, 0.7853982 }
  0x92   :  { %v361_v11 = vadd.s32 4294967169, %v50_v10  ;;  %v54_v35 = vor.u32 8388608, %v53_v16 }
  0x94   :  { %v56_v12 = vadd.s32 1, %v361_v11  ;;  %v94_v49 = vshll.u32 %v54_v35, 8 }
  0x96   :  { %vm57_vm0 = vcmp.gt.s32.totalorder %v56_v12, 0 }
  0x97   :  { %v58_v14 = vsel %vm57_vm0, %v56_v12, 0  ;;  %vm138_vm0 = vweird.f32 %v506_v8 }
  0x98   :  { %v60_v15 = vand.u32 31, %v58_v14  ;;  %v59_v18 = vshrl.u32 %v58_v14, 5 }
  0x9a   :  { %v61_v17 = vsub.s32 32, %v60_v15  ;;  %v63_v20 = vshll.u32 %v459_v19, %v60_v15  ;;  %v66_v22 = vshll.u32 %v460_v21, %v60_v15  ;;  %v69_v26 = vshll.u32 %v461_v24, %v60_v15 }
  0x9b   :  { %v72_v29 = vshll.u32 %v462_v27, %v60_v15  ;;  %v75_v32 = vshll.u32 %v463_v30, %v60_v15  ;;  %vm78_vm1 = vcmp.lt.s32.totalorder %v59_v18, 1  ;;  %vm81_vm2 = vcmp.lt.s32.totalorder %v59_v18, 4 }
  0x9c   :  { %v64_v23 = vshrl.u32 %v460_v21, %v61_v17  ;;  %v67_v25 = vshrl.u32 %v461_v24, %v61_v17  ;;  %v70_v28 = vshrl.u32 %v462_v27, %v61_v17  ;;  %v73_v31 = vshrl.u32 %v463_v30, %v61_v17  ;;  %v259_v30 = vld [vmem:[#allocation2] sm:$0xff] }
  0x9d   :  { %v76_v34 = vshrl.u32 %v464_v33, %v61_v17  ;;  %v62_v44 = vshrl.u32 %v459_v19, %v61_v17  ;;  %vm80_vm3 = vcmp.lt.s32.totalorder %v59_v18, 3  ;;  %vm79_vm4 = vcmp.lt.s32.totalorder %v59_v18, 2  ;;  %383 = vmatpush3.msra.mxu0 %v259_v30 }
  0x9e   :  { %v65_v36 = vor.u32 %v64_v23, %v63_v20  ;;  %v68_v37 = vor.u32 %v67_v25, %v66_v22  ;;  %v71_v38 = vor.u32 %v70_v28, %v69_v26  ;;  %v74_v39 = vor.u32 %v73_v31, %v72_v29 }
  0x9f   :  { %v77_v40 = vor.u32 %v76_v34, %v75_v32 }
  0xa0   :  { %v83_v41 = vsel %vm81_vm2, %v71_v38, 2102212464  ;;  %v86_v42 = vsel %vm78_vm1, %v65_v36, %v68_v37  ;;  %v90_v43 = vsel %vm78_vm1, %v68_v37, %v71_v38  ;;  %v87_v45 = vsel %vm81_vm2, %v74_v39, 920167782 }
  0xa1   :  { %v91_v46 = vsel %vm81_vm2, %v77_v40, 1326507024  ;;  %v88_v47 = vsel %vm80_vm3, %v71_v38, %v87_v45  ;;  %v82_v50 = vsel %vm78_vm1, %v62_v44, %v65_v36  ;;  %v84_v51 = vsel %vm80_vm3, %v68_v37, %v83_v41  ;;  %v369_v45 = vld [vmem:[%s537_s3] ss:$0 sm:$0xff] }
  0xa2   :  { %v92_v48 = vsel %vm80_vm3, %v74_v39, %v91_v46  ;;  %v89_v52 = vsel %vm79_vm4, %v86_v42, %v88_v47  ;;  %v85_v58 = vsel %vm79_vm4, %v82_v50, %v84_v51  ;;  %vm257_vm1 = vcmask 130048  }
  0xa3   :  { %v93_v53 = vsel %vm79_vm4, %v90_v43, %v92_v48  ;;  %v515_v56 = vmul.u32.u64.low %v94_v49, %v89_v52  ;;  %v516_v57 = vmul.u32.u64.high %v94_v49, %v89_v52, %v515_v56  ;;  %v101_v60 = vmul.u32 %v94_v49, %v85_v58 }
  0xa4   :  { %v512_v54 = vmul.u32.u64.low %v94_v49, %v93_v53  ;;  %v513_v55 = vmul.u32.u64.high %v94_v49, %v93_v53, %v512_v54  ;;  %vm270_vm2 = vcmask 261120  }
  0xa5   :  { %v104_v59 = vadd.s32 1, %v516_v57 }
  0xa6   :  { %vm103_vm5 = vc.u32 %v513_v55, %v515_v56  ;;  %v102_v10 = vadd.s32 %v515_v56, %v513_v55 }
  0xa7   :  { %v105_v61 = vsel %vm103_vm5, %v104_v59, %v516_v57 }
  0xa8   :  { %v106_v62 = vadd.s32 %v105_v61, %v101_v60 }
  0xaa   :  { %v107_v63 = vadd.s32 536870912, %v106_v62 }
  0xac   :  { %v108_v0 = vshrl.u32 %v107_v63, 30 }
  0xae   :  { %v109_v1 = vshll.u32 %v108_v0, 30  ;;  %v132_v24 = vsub.s32 4, %v108_v0 }
  0xb0   :  { %v110_v2 = vsub.s32 %v106_v62, %v109_v1  ;;  %v133_v27 = vsel %vm48_vm7, %v132_v24, %v108_v0 }
  0xb1   :  { %v135_v28 = vsel %vm47_vm8, 0, %v133_v27 }
  0xb2   :  { %v112_v4 = vsub.s32 0, %v110_v2  ;;  %v242_v29 = vadd.s32 3, %v135_v28  ;;  %v139_v31 = vand.u32 3, %v135_v28 }
  0xb4   :  { %v362_v5 = vmin.u32 %v112_v4, %v110_v2  ;;  %v243_v32 = vand.u32 3, %v242_v29  ;;  %vm144_vm10 = vcmp.eq.s32.totalorder %v139_v31, 2  ;;  %vm141_vm12 = vcmp.eq.s32.totalorder %v139_v31, 0 }
  0xb5   :  { %vm140_vm14 = vcmp.lt.s32.totalorder %v139_v31, 2 }
  0xb6   :  { %v114_v6 = vclz %v362_v5  ;;  %vm248_vm11 = vcmp.eq.s32.totalorder %v243_v32, 2  ;;  %vm245_vm13 = vcmp.eq.s32.totalorder %v243_v32, 0  ;;  %vm244_vm15 = vcmp.lt.s32.totalorder %v243_v32, 2 }
  0xb8   :  { %v363_v7 = vadd.s32 4294967294, %v114_v6 }
  0xba   :  { %vm364_vm6 = vcmp.lt.s32.totalorder %v363_v7, 0 }
  0xbb   :  { %v117_v9 = vsel %vm364_vm6, 0, %v363_v7 }
  0xbc   :  { %v118_v11 = vsub.s32 32, %v117_v9  ;;  %v122_v12 = vsub.s32 4294967266, %v117_v9  ;;  %v119_v14 = vshll.u32 %v110_v2, %v117_v9 }
  0xbe   :  { %v120_v15 = vshrl.u32 %v102_v10, %v118_v11  ;;  %v123_v16 = vadd.s32 127, %v122_v12 }
  0xc0   :  { %v121_v17 = vor.u32 %v120_v15, %v119_v14  ;;  %v124_v18 = vshll.u32 %v123_v16, 23 }
  0xc2   :  { %v125_v19 = vor.u32 4788187, %v124_v18  ;;  %v128_v21 = vcvt.s32.f32 %v121_v17 }
  0xc4   :  { %v126_v20 = vand.u32 2147483647, %v125_v19 }
  0xc6   :  { %v129_v22 = vmul.f32 %v128_v21, %v126_v20 }
  0xc8   :  { %v130_v23 = vxor.u32 2147483648, %v129_v22 }
  0xca   :  { %v131_v25 = vsel %vm48_vm7, %v130_v23, %v129_v22 }
  0xcb   :  { %v134_v26 = vsel %vm47_vm8, %v506_v8, %v131_v25 }
  0xcc   :  { %406 = vcosq.f32 %v134_v26 }
  0xcd   :  { %408 = vsinq.f32 %v134_v26 }
  0xd9   :  { %v407_v33 = vpop.eup %406 }
  0xda   :  { %v409_v34 = vpop.eup %408  ;;  %v145_v35 = vxor.u32 2147483648, %v407_v33 }
  0xdb   :  { %v142_v36 = vxor.u32 2147483648, %v409_v34 }
  0xdc   :  { %v250_v13 = vsel %vm248_vm11, %v145_v35, %v409_v34  ;;  %v146_v37 = vsel %vm144_vm10, %v145_v35, %v409_v34 }
  0xdd   :  { %v247_v38 = vsel %vm245_vm13, %v407_v33, %v142_v36  ;;  %v143_v39 = vsel %vm141_vm12, %v407_v33, %v142_v36 }
  0xde   :  { %v251_v40 = vsel %vm244_vm15, %v247_v38, %v250_v13  ;;  %v147_v3 = vsel %vm140_vm14, %v143_v39, %v146_v37 }
  0xdf   :  { %v252_v41 = vsel %vm138_vm0, nan, %v251_v40  ;;  %v148_v42 = vsel %vm138_vm0, nan, %v147_v3 }
  0xe0   :  { %254 = vrot.lane.b32.xlu0 %v252_v41, %s466_s0 }
 0x152   :  { %v255_v43 = vpop.permute.xlu0 %254 }
 0x153   :  { %v258_v44 = vsel %vm257_vm1, %v148_v42, %v255_v43 }
 0x154   :  { %385 = vmatmul.mubr.msk.f32.vlgmr.msra.gmra.mxu0 %vm270_vm2, %v258_v44 }
 0x214   :  { %v340_v46 = vpop.f32.mrf.mxu0 }
 0x215   :  { %v341_v47 = vadd.f32 %v369_v45, %v340_v46 }
 0x216   :  { %v386_v8 = vpop.f32.mrf.mxu0 }
 0x217   :  { %344 = vst [vmem:[#allocation5] sm:$0xff] %v341_v47 }
 0x218   :  { %441 = shalt.err (!%p438_p9)
}
 0x219   :  { %354 = dma.vmem_to_hbm [thread:$0]  %s352_s27, 128, %s538_s4, [#allocation4]  }
 0x21a   :  { %452 = dma.done.wait [#allocation4], 128  }
 0x21b   :  { %453 = vsyncadd [#allocation4], 4294967168 }
 0x21c   :  { %358 = vsyncpa [#allocation3], 1 }
 0x21d   :  { %359 = vsyncpa [#allocation4], 1 }

</bundles_post_ra>
